<compile_context>
chip_gen: v7x
topology: tpu7x:2x2x1
jax: 0.10.0
libtpu: 0.0.40
codegen_flags: <defaults>
</compile_context>

<pallas_src>
import math
from functools import partial

import jax
import jax.numpy as jnp
from jax.experimental import pallas as pl
from jax.experimental.pallas import tpu as pltpu


def _round_up(x, m):
    return ((x + m - 1) // m) * m


def _tpu_budgets():
    """Generation-aware (max_row_tile, scoped_vmem_limit_bytes, min_grid_blocks)."""
    try:
        cap = int(pltpu.get_tpu_info().vmem_capacity_bytes)
    except Exception:
        # conservative fallback (known-good on all generations)
        return 512, 48 * 1024 * 1024, 1
    if cap >= 96 * 1024 * 1024:
        # v5e / v6e class: 128 MiB physical VMEM, 1 TensorCore per chip
        return 1024, min(96 * 1024 * 1024, (cap * 3) // 4), 1
    # v7x class: 64 MiB physical VMEM per TC, 2 TensorCores per chip
    return 256, min(40 * 1024 * 1024, (cap * 5) // 8), 2


def _row_tile(rows, max_tile, min_grid):
    """Row tile: full block when small, else multiple-of-8 tiles; on v7x force
    at least `min_grid` blocks so both TensorCores get work."""
    if rows <= max_tile and (min_grid <= 1 or rows < 16):
        return rows
    if rows <= max_tile:
        t = _round_up(pl.cdiv(rows, min_grid), 8)
        return rows if t >= rows else t
    return max_tile


def _rows_spec(tile, feat):
    return pl.BlockSpec((tile, feat), lambda i: (i, 0))


def _full_spec(shape):
    nd = len(shape)
    return pl.BlockSpec(tuple(shape), lambda i: (0,) * nd)


def _cparams(vmem_limit_bytes):
    return pltpu.CompilerParams(dimension_semantics=("parallel",),
                                vmem_limit_bytes=vmem_limit_bytes)


# -----------------------------------------------------------------------------
# Kernel 1: per-node typed Q/K/V projections.
# One wide packed matmul x @ [Din, T*3D], one-hot masked slice-accumulate, then
# split into q (f32, needed only for targets) and kv (bf16, needed only for sources).
# -----------------------------------------------------------------------------
def _typed_qkv_kernel(x_ref, oh_ref, w_ref, b_ref, q_out, kv_out, *, num_types, out_dim):
    D = out_dim
    d3 = 3 * D
    x_b = x_ref[...].astype(jnp.bfloat16)                 # [rows, Din]
    oh = oh_ref[...]                                      # [rows, T]
    rows = q_out.shape[0]
    proj = jnp.dot(x_b, w_ref[...], preferred_element_type=jnp.float32) + b_ref[...]
    q = jnp.zeros((rows, D), jnp.float32)
    kv = jnp.zeros((rows, 2 * D), jnp.float32)
    for t in range(num_types):
        m = oh[:, t:t + 1]
        q = q + m * proj[:, t * d3:t * d3 + D]
        kv = kv + m * proj[:, t * d3 + D:(t + 1) * d3]
    q_out[...] = q
    kv_out[...] = kv.astype(jnp.bfloat16)


# -----------------------------------------------------------------------------
# Kernel 2: per-edge relation attention score + message.
#   kp = k_j @ blockdiag(rel_att[r]) ; mg = v_j @ blockdiag(rel_msg[r])
#   att = per-head-sum(q * kp) * pri[r] / sqrt(dk)
# Relation weights are packed wide ([D, R*D]); per-head sum via a precomputed
# bf16 indicator matmul; pri selected via one-hot matmul.
# -----------------------------------------------------------------------------
def _edge_attn_msg_kernel(q_ref, kv_ref, oh_ref, watt_ref, wmsg_ref, pri_ref, ssum_ref,
                          att_out, msg_out, *, num_relations, inv_sqrt_dk, out_dim):
    D = out_dim
    rows = att_out.shape[0]
    q = q_ref[...]                                        # target-side q (f32) [rows, D]
    k_b = kv_ref[:, 0:D]                                  # source-side k (bf16)
    v_b = kv_ref[:, D:2 * D]                              # source-side v (bf16)
    oh = oh_ref[...]                                      # [rows, R] one-hot (f32)

    kp_all = jnp.dot(k_b, watt_ref[...], preferred_element_type=jnp.float32)  # [rows, R*D]
    mg_all = jnp.dot(v_b, wmsg_ref[...], preferred_element_type=jnp.float32)  # [rows, R*D]

    kp = jnp.zeros((rows, D), jnp.float32)
    mg = jnp.zeros((rows, D), jnp.float32)
    for r in range(num_relations):
        m = oh[:, r:r + 1]
        kp = kp + m * kp_all[:, r * D:(r + 1) * D]
        mg = mg + m * mg_all[:, r * D:(r + 1) * D]

    pri = jnp.dot(oh, pri_ref[...], preferred_element_type=jnp.float32)        # [rows, H]
    # per-head sum via precomputed bf16 indicator matmul (stays on the MXU)
    att = jnp.dot((q * kp).astype(jnp.bfloat16), ssum_ref[...],
                  preferred_element_type=jnp.float32)                          # [rows, H]

    att_out[...] = att * pri * inv_sqrt_dk
    msg_out[...] = mg.astype(jnp.bfloat16)


# -----------------------------------------------------------------------------
# Kernel 3: moment expansion  out[:, k*D:(k+1)*D] = msg^(k+1) * att_broadcast.
# Head->lane broadcast of the (post-softmax) per-head attention via a
# precomputed bf16 indicator matmul; single lane-dense [rows, K*D] bf16 store.
# -----------------------------------------------------------------------------
def _moment_msg_kernel(msg_ref, att_ref, sexp_ref, out_ref, *, K, out_dim):
    msg = msg_ref[...].astype(jnp.float32)                # [rows, D]
    att_d = jnp.dot(att_ref[...].astype(jnp.bfloat16), sexp_ref[...],
                    preferred_element_type=jnp.float32)   # [rows, D]
    parts = []
    p = msg
    for k in range(K):
        parts.append((p * att_d).astype(jnp.bfloat16))
        if k + 1 < K:
            p = p * msg
    out_ref[...] = jnp.concatenate(parts, axis=1)         # [rows, K*D] bf16


# -----------------------------------------------------------------------------
# Kernel 4: k-th root transform + WMk bmm + moment attention (fused, no [K,N,D]
# HBM round trip). Faithful to the reference quirk: only the LAST moment
# (k == K-1) receives the sign(x) * (|x| + 1e-18)^(1/K) transform (earlier
# clones get overwritten in the PyTorch loop).
# -----------------------------------------------------------------------------
def _moment_attention_kernel(agg_ref, x_ref, wmk_ref, wak_ref, wql_ref, bql_ref,
                             wkl_ref, bkl_ref, res_out, *, K, out_dim):
    D = out_dim
    x_b = x_ref[...].astype(jnp.bfloat16)                 # [rows, D]
    qn = jnp.dot(x_b, wql_ref[...], preferred_element_type=jnp.float32) + bql_ref[...]
    front_all = jnp.dot(qn.astype(jnp.bfloat16), wak_ref[...],
                        preferred_element_type=jnp.float32)          # [rows, K*D]
    res = jnp.zeros(res_out.shape, jnp.float32)
    for k in range(K):
        a_k = agg_ref[:, k * D:(k + 1) * D]               # [rows, D] f32
        if k == K - 1:
            ax = jnp.abs(a_k) + 1e-18
            rooted = jnp.sqrt(ax) if K == 2 else jnp.exp(jnp.log(ax) * (1.0 / K))
            sgn = jnp.where(a_k > 0, 1.0, jnp.where(a_k < 0, -1.0, 0.0))
            a_k = rooted * sgn
        aggw = jnp.dot(a_k.astype(jnp.bfloat16), wmk_ref[k],
                       preferred_element_type=jnp.float32)           # [rows, D]
        tail = jnp.dot(aggw.astype(jnp.bfloat16), wkl_ref[...],
                       preferred_element_type=jnp.float32) + bkl_ref[...]
        score = jnp.sum(front_all[:, k * D:(k + 1) * D] * tail, axis=1, keepdims=True)
        res = res + jax.nn.sigmoid(score) * aggw
    res_out[...] = res


# -----------------------------------------------------------------------------
# Kernel 5: update step — packed per-type a_linear, skip mix with sigmoid(skip[t]),
# per-node affine via one-hot matmuls, LayerNorm computed ONCE.
# -----------------------------------------------------------------------------
def _update_kernel(h_ref, x_ref, oh_ref, wa_ref, ba_ref, gamma_ref, beta_ref,
                   skip_ref, out_ref, *, num_types, out_dim, eps):
    D = out_dim
    h = h_ref[...]                                        # gelu(aggr_out), [rows, D]
    x = x_ref[...]                                        # node_inp,       [rows, D]
    oh = oh_ref[...]                                      # [rows, T]
    rows = h.shape[0]
    hp = jnp.dot(h.astype(jnp.bfloat16), wa_ref[...],
                 preferred_element_type=jnp.float32) + ba_ref[...]   # [rows, T*D]
    trans = jnp.zeros((rows, D), jnp.float32)
    for t in range(num_types):
        trans = trans + oh[:, t:t + 1] * hp[:, t * D:(t + 1) * D]
    gamma_n = jnp.dot(oh, gamma_ref[...], preferred_element_type=jnp.float32)   # [rows, D]
    beta_n = jnp.dot(oh, beta_ref[...], preferred_element_type=jnp.float32)     # [rows, D]
    alpha = jnp.sum(oh * jax.nn.sigmoid(skip_ref[...]), axis=1, keepdims=True)  # [rows, 1]
    mixed = trans * alpha + x * (1.0 - alpha)
    mu = jnp.mean(mixed, axis=1, keepdims=True)
    d = mixed - mu
    var = jnp.mean(d * d, axis=1, keepdims=True)
    out_ref[...] = d * jax.lax.rsqrt(var + eps) * gamma_n + beta_n


# -----------------------------------------------------------------------------
# Parameter init (deterministic, synthetic) + one-time packing for the kernels
# -----------------------------------------------------------------------------
def init_mmgt_params(key, in_dim, out_dim, num_types, num_relations, n_heads, moments):
    assert out_dim % n_heads == 0
    d_k = out_dim // n_heads
    K = moments
    keys = jax.random.split(key, 16)

    def uni(k, shape, bound):
        return jax.random.uniform(k, shape, jnp.float32, -bound, bound)

    def glorot(k, shape):
        a = math.sqrt(6.0 / (shape[-2] + shape[-1]))
        return jax.random.uniform(k, shape, jnp.float32, -a, a)

    bi = 1.0 / math.sqrt(in_dim)
    bo = 1.0 / math.sqrt(out_dim)
    p = {}
    # per-type linears (stored as [in, out] so kernels compute x @ W + b)
    p['Wq'] = uni(keys[0], (num_types, in_dim, out_dim), bi)
    p['bq'] = uni(keys[1], (num_types, out_dim), bi)
    p['Wk'] = uni(keys[2], (num_types, in_dim, out_dim), bi)
    p['bk'] = uni(keys[3], (num_types, out_dim), bi)
    p['Wv'] = uni(keys[4], (num_types, in_dim, out_dim), bi)
    p['bv'] = uni(keys[5], (num_types, out_dim), bi)
    p['Wa'] = uni(keys[6], (num_types, out_dim, out_dim), bo)
    p['ba'] = uni(keys[7], (num_types, out_dim), bo)
    p['gamma'] = jnp.ones((num_types, out_dim), jnp.float32)
    p['beta'] = jnp.zeros((num_types, out_dim), jnp.float32)
    # relation parameters
    p['rel_pri'] = jnp.ones((num_relations, n_heads), jnp.float32)
    p['rel_att'] = glorot(keys[8], (num_relations, n_heads, d_k, d_k))
    p['rel_msg'] = glorot(keys[9], (num_relations, n_heads, d_k, d_k))
    # moment parameters
    p['WMk'] = glorot(keys[10], (K, out_dim, out_dim))
    p['Wak'] = glorot(keys[11], (K, out_dim, out_dim))
    p['Wql'] = uni(keys[12], (out_dim, out_dim), bo)
    p['bql'] = uni(keys[13], (1, out_dim), bo)
    p['Wkl'] = uni(keys[14], (out_dim, out_dim), bo)
    p['bkl'] = uni(keys[15], (1, out_dim), bo)
    p['skip'] = jnp.ones((num_types,), jnp.float32)
    return p


def _block_diag(rel):  # [R, H, dk, dk] -> [R, H*dk, H*dk] (per-head block diagonal)
    R, H, dk, _ = rel.shape
    out = jnp.zeros((R, H * dk, H * dk), rel.dtype)
    for h in range(H):
        out = out.at[:, h * dk:(h + 1) * dk, h * dk:(h + 1) * dk].set(rel[:, h])
    return out


def pack_mmgt_params(p, *, in_dim, out_dim, num_types, num_relations, n_heads, moments):
    """One-time packing (outside the forward): wide MXU-friendly layouts, block-diag
    relation matrices, bf16 weight storage (f32 accumulation in-kernel), and
    precomputed head-indicator matrices (hoisted out of the kernels)."""
    T, R, K, D = num_types, num_relations, moments, out_dim
    d_k = D // n_heads
    bf16 = jnp.bfloat16
    wqkv = jnp.concatenate(
        [jnp.concatenate([p['Wq'][t], p['Wk'][t], p['Wv'][t]], axis=1) for t in range(T)],
        axis=1)                                                          # [Din, T*3D]
    bqkv = jnp.concatenate(
        [jnp.concatenate([p['bq'][t], p['bk'][t], p['bv'][t]], axis=0) for t in range(T)],
        axis=0)[None, :]                                                 # [1, T*3D]
    att_bd = _block_diag(p['rel_att'])
    msg_bd = _block_diag(p['rel_msg'])
    rel_att_p = jnp.concatenate([att_bd[r] for r in range(R)], axis=1)   # [D, R*D]
    rel_msg_p = jnp.concatenate([msg_bd[r] for r in range(R)], axis=1)   # [D, R*D]
    wak_p = jnp.concatenate([p['Wak'][k] for k in range(K)], axis=1)     # [D, K*D]
    wa_p = jnp.concatenate([p['Wa'][t] for t in range(T)], axis=1)       # [D, T*D]
    ba_p = jnp.concatenate([p['ba'][t] for t in range(T)], axis=0)[None, :]

    # head-indicator matrices: ssum [D, H] (per-head sum), sexp [H, D] (head->lane)
    lane = jnp.arange(D)[:, None]
    head = jnp.arange(n_heads)[None, :]
    ssum = ((lane >= head * d_k) & (lane < (head + 1) * d_k)).astype(bf16)   # [D, H]
    sexp = jnp.transpose(ssum)                                               # [H, D]

    return dict(
        num_types=T, num_relations=R, n_heads=n_heads, out_dim=D, K=K, in_dim=in_dim,
        Wqkv=wqkv.astype(bf16), bqkv=bqkv,
        rel_att_p=rel_att_p.astype(bf16), rel_msg_p=rel_msg_p.astype(bf16),
        rel_pri=p['rel_pri'],
        ssum=ssum, sexp=sexp,
        WMk=p['WMk'].astype(bf16), Wak_p=wak_p.astype(bf16),
        Wql=p['Wql'].astype(bf16), bql=p['bql'],
        Wkl=p['Wkl'].astype(bf16), bkl=p['bkl'],
        Wa_p=wa_p.astype(bf16), ba_p=ba_p,
        gamma=p['gamma'], beta=p['beta'],
        skip=p['skip'][None, :],
    )


# -----------------------------------------------------------------------------
# Forward pass (MMGTConv.forward -> propagate: message / aggregate / update)
# -----------------------------------------------------------------------------
def mmgt_conv_forward(kp, node_inp, node_type, edge_index, edge_type, edge_time=None):
    del edge_time  # accepted but unused by the reference message() (RTE not applied)
    f32, bf16 = jnp.float32, jnp.bfloat16
    node_inp = node_inp.astype(f32)
    N, in_dim = node_inp.shape
    T, R, H, D, K = kp['num_types'], kp['num_relations'], kp['n_heads'], kp['out_dim'], kp['K']
    d_k = D // H
    assert in_dim == D, "MMGTConv requires in_dim == out_dim (query_linear / skip mix)"
    src, tgt = edge_index[0], edge_index[1]          # j = source, i = target
    E = src.shape[0]

    max_tile, vmem_limit, min_grid = _tpu_budgets()
    cparams = _cparams(vmem_limit)

    type_oh = jax.nn.one_hot(node_type, T, dtype=f32)   # [N, T]
    rel_oh = jax.nn.one_hot(edge_type, R, dtype=f32)    # [E, R]

    tn = _row_tile(N, max_tile, min_grid)
    te = _row_tile(E, max_tile, min_grid)
    gn, ge = (pl.cdiv(N, tn),), (pl.cdiv(E, te),)

    # --- message(): typed Q/K/V projections (Pallas, tiled over N) ---
    q_n, kv_n = pl.pallas_call(
        partial(_typed_qkv_kernel, num_types=T, out_dim=D),
        out_shape=(jax.ShapeDtypeStruct((N, D), f32),        # q: target side only
                   jax.ShapeDtypeStruct((N, 2 * D), bf16)),  # k|v: source side only
        grid=gn,
        in_specs=[_rows_spec(tn, in_dim), _rows_spec(tn, T),
                  _full_spec(kp['Wqkv'].shape), _full_spec(kp['bqkv'].shape)],
        out_specs=(_rows_spec(tn, D), _rows_spec(tn, 2 * D)),
        compiler_params=cparams,
    )(node_inp, type_oh, kp['Wqkv'], kp['bqkv'])

    # gather projections onto edges (data-dependent gather -> XLA glue)
    # TODO(synk): fold into the edge kernel via scalar-prefetch / pl.ANY row DMA.
    q_i = jnp.take(q_n, tgt, axis=0)                  # [E, D]   f32 (target q)
    kv_j = jnp.take(kv_n, src, axis=0)                # [E, 2D]  bf16 (source k, v)

    att_raw, msg = pl.pallas_call(
        partial(_edge_attn_msg_kernel, num_relations=R,
                inv_sqrt_dk=1.0 / math.sqrt(d_k), out_dim=D),
        out_shape=(jax.ShapeDtypeStruct((E, H), f32),
                   jax.ShapeDtypeStruct((E, D), bf16)),
        grid=ge,
        in_specs=[_rows_spec(te, D), _rows_spec(te, 2 * D), _rows_spec(te, R),
                  _full_spec(kp['rel_att_p'].shape), _full_spec(kp['rel_msg_p'].shape),
                  _full_spec(kp['rel_pri'].shape), _full_spec(kp['ssum'].shape)],
        out_specs=(_rows_spec(te, H), _rows_spec(te, D)),
        compiler_params=cparams,
    )(q_i, kv_j, rel_oh, kp['rel_att_p'], kp['rel_msg_p'], kp['rel_pri'], kp['ssum'])

    # segment softmax over target node (data-dependent scatter reduction -> XLA glue)
    m = jax.ops.segment_max(att_raw, tgt, num_segments=N)
    e = jnp.exp(att_raw - m[tgt])
    s = jax.ops.segment_sum(e, tgt, num_segments=N)
    att = e / (s[tgt] + 1e-16)                        # [E, H]

    # moment expansion -> single lane-dense [E, K*D] bf16 slab
    moments = pl.pallas_call(
        partial(_moment_msg_kernel, K=K, out_dim=D),
        out_shape=jax.ShapeDtypeStruct((E, K * D), bf16),
        grid=ge,
        in_specs=[_rows_spec(te, D), _rows_spec(te, H), _full_spec(kp['sexp'].shape)],
        out_specs=_rows_spec(te, K * D),
        compiler_params=cparams,
    )(msg, att, kp['sexp'])

    # --- aggregate(): faithful to reference (messages indexed by edge_index[1] —
    #     node ids into the edge axis, requires N <= E — then index_add by the
    #     same index). One gather + one f32-accumulated segment_sum over [E, K*D].
    gathered = jnp.take(moments, tgt, axis=0)                              # [E, K*D]
    agg = jax.ops.segment_sum(gathered.astype(f32), tgt, num_segments=N)   # [N, K*D]

    # fused k-th-root + WMk bmm + moment attention
    aggr_out = pl.pallas_call(
        partial(_moment_attention_kernel, K=K, out_dim=D),
        out_shape=jax.ShapeDtypeStruct((N, D), f32),
        grid=gn,
        in_specs=[_rows_spec(tn, K * D), _rows_spec(tn, D),
                  _full_spec(kp['WMk'].shape), _full_spec(kp['Wak_p'].shape),
                  _full_spec(kp['Wql'].shape), _full_spec(kp['bql'].shape),
                  _full_spec(kp['Wkl'].shape), _full_spec(kp['bkl'].shape)],
        out_specs=_rows_spec(tn, D),
        compiler_params=cparams,
    )(agg, node_inp, kp['WMk'], kp['Wak_p'], kp['Wql'], kp['bql'], kp['Wkl'], kp['bkl'])

    # --- update(): exact (erf) GELU kept in plain JAX ---
    # TODO(synk): fuse exact-erf GELU into the update kernel once lax.erf lowering
    #             in Mosaic can be relied on (saves one [N,D] f32 HBM round trip).
    h = jax.nn.gelu(aggr_out, approximate=False)

    out = pl.pallas_call(
        partial(_update_kernel, num_types=T, out_dim=D, eps=1e-5),
        out_shape=jax.ShapeDtypeStruct((N, D), f32),
        grid=gn,
        in_specs=[_rows_spec(tn, D), _rows_spec(tn, D), _rows_spec(tn, T),
                  _full_spec(kp['Wa_p'].shape), _full_spec(kp['ba_p'].shape),
                  _full_spec(kp['gamma'].shape), _full_spec(kp['beta'].shape),
                  _full_spec(kp['skip'].shape)],
        out_specs=_rows_spec(tn, D),
        compiler_params=cparams,
    )(h, node_inp, type_oh, kp['Wa_p'], kp['ba_p'], kp['gamma'], kp['beta'], kp['skip'])
    # TODO(synk): nn.Dropout is eval-mode identity here (training-mode RNG omitted).
    return out


def general_conv_forward(conv_name, params, meta_xs, node_type, edge_index, edge_type, edge_time):
    if conv_name == 'mmgt':
        return mmgt_conv_forward(params, meta_xs, node_type, edge_index, edge_type, edge_time)
    # TODO(synk): 'gcn' / 'gat' branches wrap torch_geometric layers and are not ported here.
    raise NotImplementedError(conv_name)


if __name__ == "__main__":
    key = jax.random.PRNGKey(0)
    N, E = 16, 32                  # N <= E (required by the reference aggregate() indexing)
    in_hid = out_hid = 32          # module requires in_dim == out_dim (query_linear / skip mix)
    num_types, num_relations, n_heads, moments = 2, 2, 4, 2

    k_param, k_x, k_t, k_src, k_tgt, k_et, k_time = jax.random.split(key, 7)
    raw_params = init_mmgt_params(k_param, in_hid, out_hid, num_types,
                                  num_relations, n_heads, moments)
    params = pack_mmgt_params(raw_params, in_dim=in_hid, out_dim=out_hid,
                              num_types=num_types, num_relations=num_relations,
                              n_heads=n_heads, moments=moments)

    node_inp = jax.random.normal(k_x, (N, in_hid), jnp.float32)
    node_type = jax.random.randint(k_t, (N,), 0, num_types, jnp.int32)
    src = jax.random.randint(k_src, (E,), 0, N, jnp.int32)
    tgt = jax.random.randint(k_tgt, (E,), 0, N, jnp.int32)
    edge_index = jnp.stack([src, tgt], axis=0)
    edge_type = jax.random.randint(k_et, (E,), 0, num_relations, jnp.int32)
    edge_time = jax.random.randint(k_time, (E,), 0, 10, jnp.int32)   # unused by MMGT message

    out = general_conv_forward('mmgt', params, node_inp, node_type,
                               edge_index, edge_type, edge_time)
    out = jax.block_until_ready(out)
    assert out.shape == (N, out_hid)
    assert bool(jnp.all(jnp.isfinite(out)))
    print("KERNEL_OK")
</pallas_src>

<mosaic_0001>
module attributes {stable_mosaic.version = 11 : i64} {
  func.func @_typed_qkv_kernel(%arg0: i32, %arg1: memref<16x32xf32, #tpu.memory_space<vmem>>, %arg2: memref<16x2xf32, #tpu.memory_space<vmem>>, %arg3: memref<32x192xbf16, #tpu.memory_space<vmem>>, %arg4: memref<1x192xf32, #tpu.memory_space<vmem>>, %arg5: memref<16x32xf32, #tpu.memory_space<vmem>>, %arg6: memref<16x64xbf16, #tpu.memory_space<vmem>>) attributes {dimension_semantics = [#tpu.dimension_semantics<parallel>], iteration_bounds = array<i64: 1>, scalar_prefetch = 0 : i64, scratch_operands = 0 : i64, tpu.core_type = #tpu.core_type<tc>, window_params = [{transform_indices = @transform_0, window_bounds = array<i64: 16, 32>}, {transform_indices = @transform_1, window_bounds = array<i64: 16, 2>}, {pipeline_mode = #tpu.pipeline_mode<synchronous>, transform_indices = @transform_2, window_bounds = array<i64: 32, 192>}, {pipeline_mode = #tpu.pipeline_mode<synchronous>, transform_indices = @transform_3, window_bounds = array<i64: 1, 192>}, {transform_indices = @transform_4, window_bounds = array<i64: 16, 32>}, {transform_indices = @transform_5, window_bounds = array<i64: 16, 64>}]} {
    %c0 = arith.constant 0 : index
    %c0_0 = arith.constant 0 : index
    %0 = vector.load %arg1[%c0, %c0_0] : memref<16x32xf32, #tpu.memory_space<vmem>>, vector<16x32xf32>
    %1 = arith.truncf %0 : vector<16x32xf32> to vector<16x32xbf16>
    %c0_1 = arith.constant 0 : index
    %c0_2 = arith.constant 0 : index
    %2 = vector.load %arg2[%c0_1, %c0_2] : memref<16x2xf32, #tpu.memory_space<vmem>>, vector<16x2xf32>
    %c0_3 = arith.constant 0 : index
    %c0_4 = arith.constant 0 : index
    %3 = vector.load %arg3[%c0_3, %c0_4] : memref<32x192xbf16, #tpu.memory_space<vmem>>, vector<32x192xbf16>
    %cst = arith.constant dense<0.000000e+00> : vector<16x192xf32>
    %4 = tpu.matmul %1, %3, %cst {dimension_numbers = #tpu.dot_dimension_numbers<[1], [0], [0], [1], [0, 0, 1, 1], [], []>} : vector<16x32xbf16>, vector<32x192xbf16>, vector<16x192xf32> -> vector<16x192xf32>
    %c0_5 = arith.constant 0 : index
    %c0_6 = arith.constant 0 : index
    %5 = vector.load %arg4[%c0_5, %c0_6] : memref<1x192xf32, #tpu.memory_space<vmem>>, vector<1x192xf32>
    %6 = vector.broadcast %5 : vector<1x192xf32> to vector<16x192xf32>
    %7 = arith.addf %4, %6 : vector<16x192xf32>
    %cst_7 = arith.constant 0.000000e+00 : f32
    %8 = vector.broadcast %cst_7 : f32 to vector<16x32xf32>
    %cst_8 = arith.constant 0.000000e+00 : f32
    %9 = vector.broadcast %cst_8 : f32 to vector<16x64xf32>
    %10 = vector.extract_strided_slice %2 {offsets = [0, 0], sizes = [16, 1], strides = [1, 1]} : vector<16x2xf32> to vector<16x1xf32>
    %11 = vector.extract_strided_slice %7 {offsets = [0, 0], sizes = [16, 32], strides = [1, 1]} : vector<16x192xf32> to vector<16x32xf32>
    %12 = vector.broadcast %10 : vector<16x1xf32> to vector<16x32xf32>
    %13 = arith.mulf %12, %11 : vector<16x32xf32>
    %14 = arith.addf %8, %13 : vector<16x32xf32>
    %15 = vector.extract_strided_slice %7 {offsets = [0, 32], sizes = [16, 64], strides = [1, 1]} : vector<16x192xf32> to vector<16x64xf32>
    %16 = vector.broadcast %10 : vector<16x1xf32> to vector<16x64xf32>
    %17 = arith.mulf %16, %15 : vector<16x64xf32>
    %18 = arith.addf %9, %17 : vector<16x64xf32>
    %19 = vector.extract_strided_slice %2 {offsets = [0, 1], sizes = [16, 1], strides = [1, 1]} : vector<16x2xf32> to vector<16x1xf32>
    %20 = vector.extract_strided_slice %7 {offsets = [0, 96], sizes = [16, 32], strides = [1, 1]} : vector<16x192xf32> to vector<16x32xf32>
    %21 = vector.broadcast %19 : vector<16x1xf32> to vector<16x32xf32>
    %22 = arith.mulf %21, %20 : vector<16x32xf32>
    %23 = arith.addf %14, %22 : vector<16x32xf32>
    %24 = vector.extract_strided_slice %7 {offsets = [0, 128], sizes = [16, 64], strides = [1, 1]} : vector<16x192xf32> to vector<16x64xf32>
    %25 = vector.broadcast %19 : vector<16x1xf32> to vector<16x64xf32>
    %26 = arith.mulf %25, %24 : vector<16x64xf32>
    %27 = arith.addf %18, %26 : vector<16x64xf32>
    %c0_9 = arith.constant 0 : index
    %c0_10 = arith.constant 0 : index
    %28 = vector.load %arg5[%c0_9, %c0_10] : memref<16x32xf32, #tpu.memory_space<vmem>>, vector<16x32xf32>
    tpu.vector_store %arg5[%c0_9, %c0_10], %23 {strides = array<i32>} : memref<16x32xf32, #tpu.memory_space<vmem>>, vector<16x32xf32>,
    %29 = arith.truncf %27 : vector<16x64xf32> to vector<16x64xbf16>
    %c0_11 = arith.constant 0 : index
    %c0_12 = arith.constant 0 : index
    %30 = vector.load %arg6[%c0_11, %c0_12] : memref<16x64xbf16, #tpu.memory_space<vmem>>, vector<16x64xbf16>
    tpu.vector_store %arg6[%c0_11, %c0_12], %29 {strides = array<i32>} : memref<16x64xbf16, #tpu.memory_space<vmem>>, vector<16x64xbf16>,
    return
  }
  func.func @transform_0(%arg0: i32) -> (i32, i32) {
    %c0_i32 = arith.constant 0 : i32
    %c0_i32_0 = arith.constant 0 : i32
    return %arg0, %c0_i32 : i32, i32
  }
  func.func @transform_1(%arg0: i32) -> (i32, i32) {
    %c0_i32 = arith.constant 0 : i32
    %c0_i32_0 = arith.constant 0 : i32
    return %arg0, %c0_i32 : i32, i32
  }
  func.func @transform_2(%arg0: i32) -> (i32, i32) {
    %c0_i32 = arith.constant 0 : i32
    %c0_i32_0 = arith.constant 0 : i32
    %c0_i32_1 = arith.constant 0 : i32
    return %c0_i32, %c0_i32_0 : i32, i32
  }
  func.func @transform_3(%arg0: i32) -> (i32, i32) {
    %c0_i32 = arith.constant 0 : i32
    %c0_i32_0 = arith.constant 0 : i32
    %c0_i32_1 = arith.constant 0 : i32
    return %c0_i32, %c0_i32_0 : i32, i32
  }
  func.func @transform_4(%arg0: i32) -> (i32, i32) {
    %c0_i32 = arith.constant 0 : i32
    %c0_i32_0 = arith.constant 0 : i32
    return %arg0, %c0_i32 : i32, i32
  }
  func.func @transform_5(%arg0: i32) -> (i32, i32) {
    %c0_i32 = arith.constant 0 : i32
    %c0_i32_0 = arith.constant 0 : i32
    return %arg0, %c0_i32 : i32, i32
  }
}

</mosaic_0001>

<bundles_post_ra>
// kernel: tpu_custom_call.1
= control target key start
LH: loop header
LB: loop body
LE: loop exit
PB: predicated region body
PF: predicated region fallthrough
CT: control target
= control target key end

     0   :  { %11 = vsyncpa [#allocation3], 0  ;;  %s421_s0 = inlined_call_operand.vmem [shape: f32[16,32], index: 0, kind: input, shape index: {}]   ;;  %s422_s1 = inlined_call_operand.vmem [shape: f32[16,2], index: 1, kind: input, shape index: {}]   ;;  %s423_s2 = inlined_call_operand.hbm [shape: bf16[32,192], index: 2, kind: input, shape index: {}]   ;;  %s424_s3 = inlined_call_operand.vmem [shape: f32[1,192], index: 3, kind: input, shape index: {}]   ;;  %s425_s4 = inlined_call_operand.hbm [shape: f32[16,32], index: 4, kind: output, shape index: {0}]   ;;  %s426_s5 = inlined_call_operand.hbm [shape: bf16[16,64], index: 5, kind: output, shape index: {1}]  }
   0x1   :  { %12 = vsyncpa [#allocation4], 0 }
   0x2   :  { %13 = vsyncpa [#allocation7], 0  ;;  %s320_s18 = smov [#allocation2]   ;;  %s248_s22 = scalar_lea.hbm %s423_s2, 512 }
   0x3   :  { %s23_s19 = sshll.u32 %s320_s18, 4  ;;  %p249_p0 = scmp.ne.s32.totalorder %s423_s2, %s248_s22  ;;  %s24_s19 = int_to_ptr.vmem [resolvable:$true] %s23_s19 }
   0x4   :  { %p252_p1 = scmp.lt.u32.totalorder %s248_s22, %s423_s2 }
   0x6   :  { %p254_p2 = pnand %p252_p1, %p249_p0 }
   0x8   :  { %257 = shalt.err (!%p254_p2)
}
   0x9   :  { %s258_s27 = scalar_lea.vmem %s24_s19, 512  ;;  %p263_p4 = scmp.lt.s32.totalorder %s24_s19, %s24_s19 }
   0xa   :  { %p259_p3 = scmp.ne.s32.totalorder %s24_s19, %s258_s27  ;;  %p264_p5 = scmp.lt.s32.totalorder %s258_s27, %s258_s27 }
   0xc   :  { %p265_p6 = por %p264_p5, %p263_p4 }
   0xe   :  { %p266_p7 = pnand %p265_p6, %p259_p3 }
  0x10   :  { %269 = shalt.err (!%p266_p7)
}
  0x11   :  { %s321_s28 = smov 128   ;;  %s322_s29 = smov 8  }
  0x12   :  { %29 = dma.hbm_to_vmem [thread:$0]  %s423_s2, 512, %s24_s19, [#allocation3], %s321_s28, %s321_s28, %s322_s29  }
  0x13   :  { %314 = dma.done.wait [#allocation3], 512  }
  0x14   :  { %315 = vsyncadd [#allocation3], 4294966784  ;;  %v323_v0 = vmov 0   ;;  %v324_v1 = vmov 1   ;;  %v242_v2 = vld [vmem:[#allocation2 + $0x4] ss:$8 sps:$4 sm:$0xff]   ;;  %v47_v11 = vlaneseq }
  0x15   :  { %113 = vmatprep.mubr.bf16.mxu0 %v323_v0  ;;  %240 = vset.pattern.permute.xlu0 %v324_v1  ;;  %v244_v3 = vld [vmem:[#allocation2] ss:$8 sps:$4 sm:$0xff]   ;;  %v245_v4 = vld [vmem:[#allocation2 + $0x14] ss:$8 sps:$4 sm:$0xff]   ;;  %v247_v5 = vld [vmem:[#allocation2 + $0x10] ss:$8 sps:$4 sm:$0xff]  }
  0x16   :  { %241 = vset.pattern.permute.xlu1 %v323_v0  ;;  %81 = vmatprep.subr.bf16.mxu0 %v242_v2  ;;  %v36_v6 = vld [vmem:[%s421_s0] sm:$0xff]  ;;  %v37_v7 = vld [vmem:[%s421_s0 + $0x8] sm:$0xff]  ;;  %vm77_vm0 = vcmask 261120   ;;  %v48_v12 = vshrl.u32 %v47_v11, 7  ;;  %s327_s16 = smov 96  }
  0x17   :  { %82 = vmatpush1.bf16.msra.mxu0 %v244_v3  ;;  %v39_v8 = vld [vmem:[%s422_s1] sm:$0xff]  ;;  %v40_v9 = vld [vmem:[%s422_s1 + $0x8] sm:$0xff]  ;;  %v38_v10 = vpack.c.bf16 %v37_v7, %v36_v6  ;;  %s325_s1 = smov 32  }
  0x18   :  { %83 = vmatprep.subr.bf16.mxu0 %v245_v4  ;;  %139 = vperm.xlu0 %240, %v39_v8   ;;  %v53_v13 = vsub.s32 1, %v48_v12  ;;  %v45_v14 = vld [vmem:[%s424_s3] sm:$0x3]  ;;  %v49_v15 = vsub.s32 0, %v48_v12  ;;  %s326_s3 = smov [#allocation5]  }
  0x19   :  { %126 = vperm.xlu1 %241, %v39_v8   ;;  %s192_s15 = sshll.u32 %s326_s3, 4  ;;  %s193_s15 = int_to_ptr.vmem [resolvable:$true] %s192_s15 }
  0x1a   :  { %v54_v16 = vrot.slane %v45_v14, %v53_v13  ;;  %v50_v18 = vrot.slane %v45_v14, %v49_v15  ;;  %s270_s17 = scalar_lea.vmem %s193_s15, 256  ;;  %p275_p9 = scmp.lt.s32.totalorder %s193_s15, %s193_s15 }
  0x1b   :  { %84 = vmatpush1.bf16.msra.mxu0 %v247_v5  ;;  %p271_p8 = scmp.ne.s32.totalorder %s193_s15, %s270_s17  ;;  %p276_p10 = scmp.lt.s32.totalorder %s270_s17, %s270_s17 }
  0x1c   :  { %143 = vperm.xlu0 %240, %v40_v9  }
  0x1d   :  { %131 = vperm.xlu1 %241, %v40_v9   ;;  %p277_p11 = por %p276_p10, %p275_p9 }
  0x1e   :  { %224 = vmatmul.mubr.msk.bf16.vlgmr.msra.gmra.mrb[0].mxu0 %vm77_vm0, %v38_v10 }
  0x1f   :  { %p278_p12 = pnand %p277_p11, %p271_p8 }
  0x97   :  { %v140_v17 = vpop.permute.xlu0 %139 }
  0x98   :  { %v127_v32 = vpop.permute.xlu1 %126 }
  0x9b   :  { %v144_v27 = vpop.permute.xlu0 %143 }
  0x9c   :  { %v132_v33 = vpop.permute.xlu1 %131 }
  0xf1   :  { %v115_v19 = vpop.f32.mrb[0].mxu0 }
  0xf2   :  { %v117_v20 = vpop.f32.mrb[1].mxu0  ;;  %v116_v24 = vadd.f32 %v115_v19, %v50_v18 }
  0xf3   :  { %v118_v21 = vadd.f32 %v117_v20, %v54_v16  ;;  %v119_v22 = vpop.f32.mrb[2].mxu0 }
  0xf4   :  { %v121_v23 = vpop.f32.mrb[3].mxu0  ;;  %v120_v28 = vadd.f32 %v119_v22, %v50_v18  ;;  %v146_v30 = vmul.f32 %v140_v17, %v116_v24  ;;  %v134_v34 = vmul.f32 %v127_v32, %v116_v24 }
  0xf5   :  { %v158_v25 = vmul.f32 %v140_v17, %v118_v21  ;;  %v122_v26 = vadd.f32 %v121_v23, %v54_v16 }
  0xf6   :  { %v147_v31 = vmul.f32 %v144_v27, %v120_v28  ;;  %v135_v36 = vmul.f32 %v132_v33, %v120_v28 }
  0xf7   :  { %v159_v29 = vmul.f32 %v144_v27, %v122_v26  ;;  %162 = vrot.lane.b32.xlu0 %v158_v25, %s325_s1 }
  0xf9   :  { %164 = vrot.lane.b32.xlu1 %v159_v29, %s325_s1 }
  0xfb   :  { %150 = vrot.lane.b32.xlu0 %v146_v30, %s325_s1 }
  0xfd   :  { %152 = vrot.lane.b32.xlu1 %v147_v31, %s325_s1 }
 0x169   :  { %v163_v35 = vpop.permute.xlu0 %162 }
 0x16a   :  { %v168_v37 = vadd.f32 %v163_v35, %v134_v34 }
 0x16b   :  { %v165_v38 = vpop.permute.xlu1 %164 }
 0x16c   :  { %v227_v39 = vpack.c.bf16 %v168_v37, %v168_v37  ;;  %v169_v40 = vadd.f32 %v165_v38, %v135_v36 }
 0x16d   :  { %v151_v41 = vpop.permute.xlu0 %150 }
 0x16e   :  { %v228_v42 = vpack.c.bf16 %v169_v40, %v169_v40  ;;  %v156_v43 = vadd.f32 %v151_v41, %v134_v34  ;;  %178 = vrot.lane.b32.xlu0 %v227_v39, %s327_s16 }
 0x16f   :  { %v153_v44 = vpop.permute.xlu1 %152 }
 0x170   :  { %170 = vst.msk [vmem:[#allocation5] sm:$0xff] %vm77_vm0, %v156_v43  ;;  %v157_v45 = vadd.f32 %v153_v44, %v135_v36  ;;  %180 = vrot.lane.b32.xlu1 %v228_v42, %s327_s16 }
 0x172   :  { %171 = vst.msk [vmem:[#allocation5 + $0x8] sm:$0xff] %vm77_vm0, %v157_v45 }
 0x173   :  { %281 = shalt.err (!%p278_p12)
}
 0x174   :  { %s282_s20 = scalar_lea.hbm %s425_s4, 256 }
 0x175   :  { %p283_p13 = scmp.ne.s32.totalorder %s425_s4, %s282_s20  ;;  %p286_p0 = scmp.lt.u32.totalorder %s282_s20, %s425_s4 }
 0x177   :  { %p288_p1 = pnand %p286_p0, %p283_p13 }
 0x179   :  { %291 = shalt.err (!%p288_p1)
}
 0x17a   :  { %198 = dma.vmem_to_hbm [thread:$0]  %s193_s15, 256, %s425_s4, [#allocation4], %s321_s28, %s321_s28, %s322_s29   ;;  %vm184_vm1 = vcmask 519168  }
 0x17b   :  { %s328_s27 = smov [#allocation6]  }
 0x17c   :  { %s204_s30 = sshll.u32 %s328_s27, 4  ;;  %s205_s30 = int_to_ptr.vmem [resolvable:$true] %s204_s30 }
 0x17d   :  { %s292_s6 = scalar_lea.vmem %s205_s30, 128  ;;  %p297_p3 = scmp.lt.s32.totalorder %s205_s30, %s205_s30 }
 0x17e   :  { %p293_p2 = scmp.ne.s32.totalorder %s205_s30, %s292_s6  ;;  %p298_p4 = scmp.lt.s32.totalorder %s292_s6, %s292_s6 }
 0x180   :  { %p299_p5 = por %p298_p4, %p297_p3 }
 0x182   :  { %p300_p6 = pnand %p299_p5, %p293_p2 }
 0x1e0   :  { %v179_v46 = vpop.permute.xlu0 %178 }
 0x1e1   :  { %185 = vst.msk [vmem:[#allocation6] sm:$0xf] %vm184_vm1, %v179_v46 }
 0x1e2   :  { %v181_v47 = vpop.permute.xlu1 %180 }
 0x1e3   :  { %186 = vst.msk [vmem:[#allocation6 + $0x4] sm:$0xf] %vm184_vm1, %v181_v47 }
 0x1e4   :  { %303 = shalt.err (!%p300_p6)
}
 0x1e5   :  { %s304_s9 = scalar_lea.hbm %s426_s5, 128 }
 0x1e6   :  { %p305_p7 = scmp.ne.s32.totalorder %s426_s5, %s304_s9  ;;  %p308_p8 = scmp.lt.u32.totalorder %s304_s9, %s426_s5 }
 0x1e8   :  { %p310_p9 = pnand %p308_p8, %p305_p7 }
 0x1ea   :  { %313 = shalt.err (!%p310_p9)
}
 0x1eb   :  { %s329_s2 = smov 64   ;;  %s330_s11 = smov 4  }
 0x1ec   :  { %210 = dma.vmem_to_hbm [thread:$0]  %s205_s30, 128, %s426_s5, [#allocation7], %s329_s2, %s329_s2, %s330_s11  }
 0x1ed   :  { %316 = dma.done.wait [#allocation4], 256  }
 0x1ee   :  { %317 = vsyncadd [#allocation4], 4294967040 }
 0x1ef   :  { %318 = dma.done.wait [#allocation7], 128  }
 0x1f0   :  { %319 = vsyncadd [#allocation7], 4294967168 }
 0x1f1   :  { %217 = vsyncpa [#allocation3], 1 }
 0x1f2   :  { %218 = vsyncpa [#allocation4], 1 }
 0x1f3   :  { %219 = vsyncpa [#allocation7], 1 }

</bundles_post_ra>
